<compile_context>
chip_gen: v6e
topology: v6e:2x2x1
jax: 0.10.0
libtpu: 0.0.40
codegen_flags: <defaults>
</compile_context>

<pallas_src>
import jax
import jax.numpy as jnp
from jax.experimental import pallas as pl
from jax.experimental.pallas import tpu as pltpu

INPUT_DIM = 2
NUM_CS = 20
HIDDEN = 32      # hidden width of the orig_model stand-in
BATCH = 128
LANE = 128       # TPU lane width


def mlp_kernel(x_ref, wb3_ref, wb4_ref, o_ref):
    """Fused forward on a (features, batch) layout -- batch on lanes.

    x_ref  : (INPUT_DIM, TN)        batch tile, lane-dense
    wb3_ref: (HIDDEN, INPUT_DIM+1)  packed [W3_eff | b3_eff]
    wb4_ref: (INPUT_DIM, HIDDEN+1)  packed [W4     | b4    ]
    o_ref  : (INPUT_DIM, TN)
    """
    x = x_ref[...]                                   # (2, TN)
    wb3 = wb3_ref[...]                               # (H, 3)
    wb4 = wb4_ref[...]                               # (2, H+1)

    # Layer 1 (K = INPUT_DIM = 2): VPU broadcast mul-add, bias fused in.
    h = wb3[:, INPUT_DIM:INPUT_DIM + 1]              # (H, 1) -> broadcasts on lanes
    for k in range(INPUT_DIM):                       # unrolled (INPUT_DIM == 2)
        h = h + wb3[:, k:k + 1] * x[k:k + 1, :]      # (H,1)*(1,TN) -> (H,TN)
    h = jnp.maximum(h, 0.0)

    # Layer 2 (K = HIDDEN): MXU matmul, output stays lane-dense.
    o = jnp.dot(wb4[:, :HIDDEN], h, preferred_element_type=jnp.float32)
    o = o + wb4[:, HIDDEN:HIDDEN + 1]                # (2, 1) lane broadcast
    o_ref[...] = o.astype(o_ref.dtype)


def modified_ood(x, apply_c_w, apply_c_b, remove_c_w, remove_c_b, w3, b3, w4, b4):
    """ModifiedOod forward. Weights use torch (out, in) convention."""
    n, d_in = x.shape
    assert d_in == INPUT_DIM

    # ---- Fold apply_c -> remove_c (affine composition) in the wrapper -----
    #   h1 = R (A x + a) + r = (R A) x + (R a + r)
    W12 = remove_c_w @ apply_c_w                         # (2, 2) == eye here
    B12 = remove_c_w @ apply_c_b + remove_c_b            # (2,)   == 0 here
    # ---- Fold into orig_model's first Linear ------------------------------
    w3_eff = w3 @ W12                                    # (H, 2)
    b3_eff = w3 @ B12 + b3                               # (H,)

    # Pack weights + biases: fewer inputs => fewer DMA descriptors.
    wb3 = jnp.concatenate([w3_eff, b3_eff[:, None]], axis=1)  # (H, 3)
    wb4 = jnp.concatenate([w4, b4[:, None]], axis=1)          # (2, H+1)

    # Batch maps to lanes: work on x^T, pad batch up to a multiple of the tile.
    tn = LANE * min(8, pl.cdiv(n, LANE))                 # 128..1024 lanes/step
    n_pad = pl.cdiv(n, tn) * tn
    xt = x.T                                             # (2, n)
    if n_pad != n:
        xt = jnp.pad(xt, ((0, 0), (0, n_pad - n)))

    grid = (n_pad // tn,)
    out_t = pl.pallas_call(
        mlp_kernel,
        out_shape=jax.ShapeDtypeStruct((INPUT_DIM, n_pad), jnp.float32),
        grid=grid,
        in_specs=[
            pl.BlockSpec((INPUT_DIM, tn), lambda i: (0, i)),   # x^T batch tile
            pl.BlockSpec(wb3.shape, lambda i: (0, 0)),         # [W3_eff|b3_eff]
            pl.BlockSpec(wb4.shape, lambda i: (0, 0)),         # [W4|b4]
        ],
        out_specs=pl.BlockSpec((INPUT_DIM, tn), lambda i: (0, i)),
        compiler_params=pltpu.CompilerParams(
            dimension_semantics=("parallel",)),
    )(xt, wb3, wb4)

    return out_t[:, :n].T                                # back to (n, 2)


def build_params(key):
    k_cs, k_w3, k_b3, k_w4, k_b4 = jax.random.split(key, 5)

    # cs: (num_cs, INPUT_DIM); clamp tiny magnitudes like the torch spec.
    cs = jax.random.normal(k_cs, (NUM_CS, INPUT_DIM), dtype=jnp.float32)
    cs = jnp.where(jnp.abs(cs) > 1e-4, cs, 1e-4)

    # apply_c: Linear(2, 2+num_cs): weight [:2]=eye(2), [2:]=cs ; bias = 0
    apply_c_w = jnp.concatenate([jnp.eye(INPUT_DIM, dtype=jnp.float32), cs], axis=0)
    apply_c_b = jnp.zeros((INPUT_DIM + NUM_CS,), dtype=jnp.float32)

    # remove_c: Linear(2+num_cs, 2): weight [:, :2]=eye(2), [:, 2:]=0 ; bias = 0
    remove_c_w = jnp.concatenate(
        [jnp.eye(INPUT_DIM, dtype=jnp.float32),
         jnp.zeros((INPUT_DIM, NUM_CS), dtype=jnp.float32)], axis=1)
    remove_c_b = jnp.zeros((INPUT_DIM,), dtype=jnp.float32)

    # orig_model stand-in MLP params (deterministic), torch (out, in) layout.
    w3 = 0.1 * jax.random.normal(k_w3, (HIDDEN, INPUT_DIM), dtype=jnp.float32)
    b3 = 0.1 * jax.random.normal(k_b3, (HIDDEN,), dtype=jnp.float32)
    w4 = 0.1 * jax.random.normal(k_w4, (INPUT_DIM, HIDDEN), dtype=jnp.float32)
    b4 = 0.1 * jax.random.normal(k_b4, (INPUT_DIM,), dtype=jnp.float32)

    return dict(apply_c_w=apply_c_w, apply_c_b=apply_c_b,
                remove_c_w=remove_c_w, remove_c_b=remove_c_b,
                w3=w3, b3=b3, w4=w4, b4=b4)


def reference(x, p):
    # Unfused chain, exactly mirroring the PyTorch module.
    h = x @ p["apply_c_w"].T + p["apply_c_b"]
    h = h @ p["remove_c_w"].T + p["remove_c_b"]
    z = jnp.maximum(h @ p["w3"].T + p["b3"], 0.0)
    return z @ p["w4"].T + p["b4"]


if __name__ == "__main__":
    key = jax.random.PRNGKey(0)
    k_x, k_p = jax.random.split(key)
    x = jax.random.normal(k_x, (BATCH, INPUT_DIM), dtype=jnp.float32)
    p = build_params(k_p)

    out = modified_ood(x,
                       p["apply_c_w"], p["apply_c_b"],
                       p["remove_c_w"], p["remove_c_b"],
                       p["w3"], p["b3"], p["w4"], p["b4"])
    out = jax.block_until_ready(out)

    ref = reference(x, p)
    assert out.shape == (BATCH, INPUT_DIM)
    assert jnp.allclose(out, ref, atol=1e-5, rtol=1e-5)
    print("KERNEL_OK")
</pallas_src>

<mosaic_0001>
module attributes {stable_mosaic.version = 11 : i64} {
  func.func @mlp_kernel(%arg0: i32, %arg1: memref<2x128xf32, #tpu.memory_space<vmem>>, %arg2: memref<32x3xf32, #tpu.memory_space<vmem>>, %arg3: memref<2x33xf32, #tpu.memory_space<vmem>>, %arg4: memref<2x128xf32, #tpu.memory_space<vmem>>) attributes {dimension_semantics = [#tpu.dimension_semantics<parallel>], iteration_bounds = array<i64: 1>, scalar_prefetch = 0 : i64, scratch_operands = 0 : i64, tpu.core_type = #tpu.core_type<tc>, window_params = [{transform_indices = @transform_0, window_bounds = array<i64: 2, 128>}, {pipeline_mode = #tpu.pipeline_mode<synchronous>, transform_indices = @transform_1, window_bounds = array<i64: 32, 3>}, {pipeline_mode = #tpu.pipeline_mode<synchronous>, transform_indices = @transform_2, window_bounds = array<i64: 2, 33>}, {transform_indices = @transform_3, window_bounds = array<i64: 2, 128>}]} {
    %c0 = arith.constant 0 : index
    %c0_0 = arith.constant 0 : index
    %0 = vector.load %arg1[%c0, %c0_0] : memref<2x128xf32, #tpu.memory_space<vmem>>, vector<2x128xf32>
    %c0_1 = arith.constant 0 : index
    %c0_2 = arith.constant 0 : index
    %1 = vector.load %arg2[%c0_1, %c0_2] : memref<32x3xf32, #tpu.memory_space<vmem>>, vector<32x3xf32>
    %c0_3 = arith.constant 0 : index
    %c0_4 = arith.constant 0 : index
    %2 = vector.load %arg3[%c0_3, %c0_4] : memref<2x33xf32, #tpu.memory_space<vmem>>, vector<2x33xf32>
    %3 = vector.extract_strided_slice %1 {offsets = [0, 2], sizes = [32, 1], strides = [1, 1]} : vector<32x3xf32> to vector<32x1xf32>
    %4 = vector.extract_strided_slice %1 {offsets = [0, 0], sizes = [32, 1], strides = [1, 1]} : vector<32x3xf32> to vector<32x1xf32>
    %5 = vector.extract_strided_slice %0 {offsets = [0, 0], sizes = [1, 128], strides = [1, 1]} : vector<2x128xf32> to vector<1x128xf32>
    %6 = vector.broadcast %4 : vector<32x1xf32> to vector<32x128xf32>
    %7 = vector.broadcast %5 : vector<1x128xf32> to vector<32x128xf32>
    %8 = arith.mulf %6, %7 : vector<32x128xf32>
    %9 = vector.broadcast %3 : vector<32x1xf32> to vector<32x128xf32>
    %10 = arith.addf %9, %8 : vector<32x128xf32>
    %11 = vector.extract_strided_slice %1 {offsets = [0, 1], sizes = [32, 1], strides = [1, 1]} : vector<32x3xf32> to vector<32x1xf32>
    %12 = vector.extract_strided_slice %0 {offsets = [1, 0], sizes = [1, 128], strides = [1, 1]} : vector<2x128xf32> to vector<1x128xf32>
    %13 = vector.broadcast %11 : vector<32x1xf32> to vector<32x128xf32>
    %14 = vector.broadcast %12 : vector<1x128xf32> to vector<32x128xf32>
    %15 = arith.mulf %13, %14 : vector<32x128xf32>
    %16 = arith.addf %10, %15 : vector<32x128xf32>
    %cst = arith.constant 0.000000e+00 : f32
    %17 = vector.broadcast %cst : f32 to vector<32x128xf32>
    %18 = arith.maximumf %16, %17 : vector<32x128xf32>
    %19 = vector.extract_strided_slice %2 {offsets = [0, 0], sizes = [2, 32], strides = [1, 1]} : vector<2x33xf32> to vector<2x32xf32>
    %cst_5 = arith.constant dense<0.000000e+00> : vector<2x128xf32>
    %20 = tpu.matmul %19, %18, %cst_5 {dimension_numbers = #tpu.dot_dimension_numbers<[1], [0], [0], [1], [0, 0, 1, 1], [], []>} : vector<2x32xf32>, vector<32x128xf32>, vector<2x128xf32> -> vector<2x128xf32>
    %21 = vector.extract_strided_slice %2 {offsets = [0, 32], sizes = [2, 1], strides = [1, 1]} : vector<2x33xf32> to vector<2x1xf32>
    %22 = vector.broadcast %21 : vector<2x1xf32> to vector<2x128xf32>
    %23 = arith.addf %20, %22 : vector<2x128xf32>
    %c0_6 = arith.constant 0 : index
    %c0_7 = arith.constant 0 : index
    %24 = vector.load %arg4[%c0_6, %c0_7] : memref<2x128xf32, #tpu.memory_space<vmem>>, vector<2x128xf32>
    tpu.vector_store %arg4[%c0_6, %c0_7], %23 {strides = array<i32>} : memref<2x128xf32, #tpu.memory_space<vmem>>, vector<2x128xf32>,
    return
  }
  func.func @transform_0(%arg0: i32) -> (i32, i32) {
    %c0_i32 = arith.constant 0 : i32
    %c0_i32_0 = arith.constant 0 : i32
    return %c0_i32, %arg0 : i32, i32
  }
  func.func @transform_1(%arg0: i32) -> (i32, i32) {
    %c0_i32 = arith.constant 0 : i32
    %c0_i32_0 = arith.constant 0 : i32
    %c0_i32_1 = arith.constant 0 : i32
    return %c0_i32, %c0_i32_0 : i32, i32
  }
  func.func @transform_2(%arg0: i32) -> (i32, i32) {
    %c0_i32 = arith.constant 0 : i32
    %c0_i32_0 = arith.constant 0 : i32
    %c0_i32_1 = arith.constant 0 : i32
    return %c0_i32, %c0_i32_0 : i32, i32
  }
  func.func @transform_3(%arg0: i32) -> (i32, i32) {
    %c0_i32 = arith.constant 0 : i32
    %c0_i32_0 = arith.constant 0 : i32
    return %c0_i32, %arg0 : i32, i32
  }
}

</mosaic_0001>

<bundles_post_ra>
// kernel: tpu_custom_call.1
= control target key start
LH: loop header
LB: loop body
LE: loop exit
PB: predicated region body
PF: predicated region fallthrough
CT: control target
= control target key end

     0   :  { %v249_v1 = vmov 2   ;;  %v250_v2 = vmov 0   ;;  %s302_s0 = inlined_call_operand.vmem [shape: f32[2,128], index: 0, kind: input, shape index: {}]   ;;  %s303_s1 = inlined_call_operand.vmem [shape: f32[32,3], index: 1, kind: input, shape index: {}]   ;;  %s304_s2 = inlined_call_operand.vmem [shape: f32[2,33], index: 2, kind: input, shape index: {}]   ;;  %s305_s3 = inlined_call_operand.hbm [shape: f32[2,128], index: 3, kind: output, shape index: {}]  }
   0x1   :  { %v19_v0 = vld [vmem:[%s303_s1 + $0x18] sm:$0xff]  ;;  %219 = vset.pattern.permute.xlu1 %v249_v1  ;;  %218 = vset.pattern.permute.xlu0 %v250_v2 }
   0x2   :  { %8 = vsyncpa [#allocation3], 0  ;;  %62 = vperm.xlu1 %219, %v19_v0   ;;  %38 = vperm.xlu0 %218, %v19_v0   ;;  %v18_v3 = vld [vmem:[%s303_s1 + $0x10] sm:$0xff]  ;;  %v251_v4 = vmov 1   ;;  %v17_v5 = vld [vmem:[%s303_s1 + $0x8] sm:$0xff]  ;;  %v252_v6 = vmov 0.0   ;;  %v41_v10 = vlaneseq }
   0x3   :  { %200 = vmatprep.subr.mxu0 %v252_v6  ;;  %v16_v7 = vld [vmem:[%s303_s1] sm:$0xff]  ;;  %vm253_vm0 = vmmov 0   ;;  %v254_v9 = vmov 32   ;;  %vm106_vm1 = vcmask 261120  }
   0x4   :  { %208 = vmatprep.mubr.msk.f32.mxu0 %vm253_vm0, %v252_v6  ;;  %v20_v8 = vld [vmem:[%s304_s2] sm:$0x3]  ;;  %v42_v11 = vshrl.u32 %v41_v10, 7 }
   0x5   :  { %v15_v13 = vld [vmem:[%s302_s0] sm:$0x3]  ;;  %s255_s0 = smov [#allocation2]  }
   0x6   :  { %220 = vset.pattern.permute.xlu1 %v251_v4  ;;  %33 = vperm.xlu0 %218, %v18_v3   ;;  %v43_v12 = vsub.s32 0, %v42_v11  ;;  %v87_v15 = vsub.s32 1, %v42_v11  ;;  %s186_s2 = sshll.u32 %s255_s0, 4  ;;  %s187_s2 = int_to_ptr.vmem [resolvable:$true] %s186_s2 }
   0x7   :  { %82 = vperm.xlu1 %220, %v19_v0   ;;  %s227_s23 = scalar_lea.vmem %s187_s2, 32  ;;  %p232_p1 = scmp.lt.s32.totalorder %s187_s2, %s187_s2 }
   0x8   :  { %v44_v14 = vrot.slane %v15_v13, %v43_v12  ;;  %v88_v19 = vrot.slane %v15_v13, %v87_v15  ;;  %p228_p0 = scmp.ne.s32.totalorder %s187_s2, %s227_s23  ;;  %p233_p2 = scmp.lt.s32.totalorder %s227_s23, %s227_s23 }
   0xa   :  { %28 = vperm.xlu0 %218, %v17_v5   ;;  %p234_p3 = por %p233_p2, %p232_p1 }
   0xb   :  { %221 = vset.pattern.permute.xlu1 %v249_v1 }
   0xc   :  { %58 = vperm.xlu1 %221, %v18_v3   ;;  %p235_p4 = pnand %p234_p3, %p228_p0 }
   0xe   :  { %222 = vset.pattern.permute.xlu0 %v251_v4 }
   0xf   :  { %78 = vperm.xlu0 %222, %v18_v3  }
  0x10   :  { %223 = vset.pattern.permute.xlu1 %v250_v2 }
  0x11   :  { %23 = vperm.xlu1 %223, %v16_v7  }
  0x13   :  { %74 = vperm.xlu0 %222, %v17_v5  }
  0x15   :  { %224 = vset.pattern.permute.xlu1 %v249_v1 }
  0x16   :  { %54 = vperm.xlu1 %224, %v17_v5  }
  0x17   :  { %70 = vperm.xlu0 %222, %v16_v7  }
  0x1a   :  { %50 = vperm.xlu1 %224, %v16_v7  }
  0x1b   :  { %226 = vset.pattern.permute.xlu0 %v254_v9 }
  0x1e   :  { %225 = vset.pattern.permute.xlu1 %v254_v9 }
  0x1f   :  { %103 = vperm.xlu1 %225, %v20_v8  }
  0x7d   :  { %v63_v16 = vpop.permute.xlu1 %62  ;;  %v39_v17 = vpop.permute.xlu0 %38 }
  0x7e   :  { %v48_v18 = vmul.f32 %v44_v14, %v39_v17 }
  0x80   :  { %v68_v22 = vadd.f32 %v63_v16, %v48_v18 }
  0x81   :  { %v34_v20 = vpop.permute.xlu0 %33 }
  0x82   :  { %v83_v21 = vpop.permute.xlu1 %82  ;;  %v47_v28 = vmul.f32 %v44_v14, %v34_v20 }
  0x83   :  { %v92_v23 = vmul.f32 %v88_v19, %v83_v21 }
  0x85   :  { %v29_v24 = vpop.permute.xlu0 %28  ;;  %v96_v25 = vadd.f32 %v92_v23, %v68_v22 }
  0x86   :  { %v46_v36 = vmul.f32 %v44_v14, %v29_v24 }
  0x87   :  { %v59_v26 = vpop.permute.xlu1 %58  ;;  %v100_v27 = vmax.f32 %v96_v25, 0.0 }
  0x88   :  { %v67_v30 = vadd.f32 %v59_v26, %v47_v28 }
  0x89   :  { %201 = vmatpush3.msra.mxu0 %v100_v27 }
  0x8a   :  { %v79_v29 = vpop.permute.xlu0 %78  ;;  %202 = vmatprep.subr.mxu0 %v252_v6 }
  0x8b   :  { %v91_v31 = vmul.f32 %v88_v19, %v79_v29 }
  0x8c   :  { %v24_v32 = vpop.permute.xlu1 %23 }
  0x8d   :  { %v95_v33 = vadd.f32 %v91_v31, %v67_v30  ;;  %v45_v41 = vmul.f32 %v44_v14, %v24_v32 }
  0x8e   :  { %v75_v34 = vpop.permute.xlu0 %74 }
  0x8f   :  { %v99_v35 = vmax.f32 %v95_v33, 0.0  ;;  %v90_v38 = vmul.f32 %v88_v19, %v75_v34 }
  0x91   :  { %v55_v37 = vpop.permute.xlu1 %54  ;;  %203 = vmatpush3.msra.mxu0 %v99_v35 }
  0x92   :  { %v66_v39 = vadd.f32 %v55_v37, %v46_v36  ;;  %204 = vmatprep.subr.mxu0 %v252_v6  ;;  %v71_v40 = vpop.permute.xlu0 %70 }
  0x93   :  { %v89_v45 = vmul.f32 %v88_v19, %v71_v40 }
  0x94   :  { %v94_v42 = vadd.f32 %v90_v38, %v66_v39 }
  0x95   :  { %v51_v43 = vpop.permute.xlu1 %50 }
  0x96   :  { %v98_v44 = vmax.f32 %v94_v42, 0.0  ;;  %v65_v46 = vadd.f32 %v51_v43, %v45_v41 }
  0x98   :  { %v93_v47 = vadd.f32 %v89_v45, %v65_v46  ;;  %205 = vmatpush3.msra.mxu0 %v98_v44 }
  0x99   :  { %206 = vmatprep.subr.mxu0 %v252_v6 }
  0x9a   :  { %v97_v48 = vmax.f32 %v93_v47, 0.0  ;;  %v104_v49 = vpop.permute.xlu1 %103 }
  0x9c   :  { %207 = vmatpush3.msra.mxu0 %v97_v48 }
  0x9d   :  { %209 = vmatmul.mubr.msk.f32.vlgmr.msra.gmra.mxu0 %vm106_vm1, %v20_v8 }
 0x15d   :  { %v175_v50 = vpop.f32.mrf.mxu0 }
 0x15e   :  { %v176_v51 = vadd.f32 %v175_v50, %v104_v49 }
 0x15f   :  { %v210_v52 = vpop.f32.mrf.mxu0 }
 0x160   :  { %179 = vst [vmem:[#allocation2] sm:$0x3] %v176_v51 }
 0x161   :  { %238 = shalt.err (!%p235_p4)
}
 0x162   :  { %189 = dma.vmem_to_hbm [thread:$0]  %s187_s2, 32, %s305_s3, [#allocation3]  }
 0x163   :  { %247 = dma.done.wait [#allocation3], 32  }
 0x164   :  { %248 = vsyncadd [#allocation3], 4294967264 }
 0x165   :  { %193 = vsyncpa [#allocation3], 1 }

</bundles_post_ra>
